<compile_context>
chip_gen: v5e
topology: v5e:2x2
jax: 0.10.0
libtpu: 0.0.40
codegen_flags: <defaults>
</compile_context>

<pallas_src>
import functools

import jax
import jax.numpy as jnp
from jax.experimental import pallas as pl
from jax.experimental.pallas import tpu as pltpu


def _round_up(v, m):
    return (v + m - 1) // m * m


# ----------------------------------------------------------------------------
# Kernel: one group of `nb` images per grid step (images concatenated along lanes).
#   x_ref  : (Cpad, L)        input, channels-first, L = nb*HW lanes
#   m_ref  : (9, L)           precomputed per-tap validity masks (0/1)
#   wc1_ref: (Cout, 9*Cpad)   BN-folded conv1 weight, im2col-flattened
#   bc1_ref: (Cout, 1)
#   wc2_ref: (Cout, 9*Cout)   BN-folded conv2 weight, im2col-flattened
#   bc2_ref: (Cout, 1)
#   w1t_ref: (Cout, red)      SE Linear1 weight (transposed)
#   b1_ref : (1, red)
#   w2_ref : (Cout, red)      SE Linear2 weight
#   b2_ref : (Cout, 1)
#   ws_ref : (Cout, Cpad)     1x1 skip-conv weight (ONLY present when in != out)
#   o_ref  : (Cout, L)
# ----------------------------------------------------------------------------
def _res_se_block_kernel(x_ref, m_ref, wc1_ref, bc1_ref, wc2_ref, bc2_ref,
                         w1t_ref, b1_ref, w2_ref, b2_ref, *rest,
                         W, HW, nb, has_skip, mxu_dtype):
    if has_skip:
        ws_ref, o_ref = rest
    else:
        (o_ref,) = rest

    L = nb * HW
    x = x_ref[...]                                           # (Cpad, L), mxu_dtype

    # 9 precomputed tap masks, each (1, L); shared by both convs.
    mask_rows = [m_ref[pl.ds(t, 1), :] for t in range(9)]

    def conv3x3(feat, w_ref, b_ref):
        """3x3 'SAME' conv as ONE im2col matmul: the 9 shifted taps are stacked
        along the contraction (sublane) axis -> (9*Ck, L); (Cout,9*Ck) @ (9*Ck,L)."""
        feat = feat.astype(mxu_dtype)
        taps = []
        t = 0
        for dy in (-1, 0, 1):
            for dx in (-1, 0, 1):
                s = dy * W + dx                              # want sh[p] = feat[p+s]
                rolled = feat if s == 0 else pltpu.roll(feat, shift=(-s) % L, axis=1)
                taps.append(rolled * mask_rows[t])           # zero outside the image
                t += 1
        stacked = jnp.concatenate(taps, axis=0)              # (9*Ck, L)
        y = jnp.dot(w_ref[...], stacked, preferred_element_type=jnp.float32)
        return y + b_ref[...]                                # (Cout, L) f32

    # conv1 -> BN1 (folded) -> relu ; conv2 -> BN2 (folded)
    y1 = jnp.maximum(conv3x3(x, wc1_ref, bc1_ref), 0.0)
    y2 = conv3x3(y1, wc2_ref, bc2_ref)
    cout = y2.shape[0]

    # residual skip: 1x1 conv over the whole lane block, or plain pass-through
    # when in_channels == out_channels (no identity-matrix matmul).
    if has_skip:
        skip = jnp.dot(ws_ref[...], x, preferred_element_type=jnp.float32)
    else:
        skip = x[:cout, :].astype(jnp.float32)

    w1t = w1t_ref[...]                                       # (Cout, red) f32
    b1 = b1_ref[...]                                         # (1, red)
    w2 = w2_ref[...]                                         # (Cout, red)
    b2 = b2_ref[...]                                         # (Cout, 1)

    # SE gate (per image) + relu + skip.  All elementwise math in f32.
    for n in range(nb):
        lo = n * HW
        y2n = y2[:, lo:lo + HW]                              # (Cout, HW)
        s = jnp.mean(y2n, axis=1, keepdims=True)             # (Cout, 1) global avg pool
        z1 = jnp.maximum(jnp.sum(w1t * s, axis=0, keepdims=True) + b1, 0.0)   # (1, red)
        e = jax.nn.sigmoid(jnp.sum(w2 * z1, axis=1, keepdims=True) + b2)      # (Cout, 1)
        res = jnp.maximum(y2n * e, 0.0) + skip[:, lo:lo + HW]
        o_ref[:, pl.ds(lo, HW)] = res.astype(o_ref.dtype)


# ----------------------------------------------------------------------------
# Parameter glue (plain JAX, tiny tensors)
# ----------------------------------------------------------------------------
def _fold_bn_into_conv(w, gamma, beta, mean, var, eps=1e-5):
    """Fold eval-mode BatchNorm into a bias-free conv.  w: (Cout, Cin, 3, 3)."""
    scale = gamma / jnp.sqrt(var + eps)
    wf = w * scale.reshape(-1, 1, 1, 1)
    bf = beta - scale * mean
    return wf, bf


def _flatten_conv_weight(w, cin_pad, dtype):
    """(Cout, Cin, 3, 3) -> zero-pad Cin -> (Cout, 9*Cin_pad), tap-major (ky, kx)."""
    cout, cin = w.shape[:2]
    if cin_pad > cin:
        w = jnp.pad(w, ((0, 0), (0, cin_pad - cin), (0, 0), (0, 0)))
    return jnp.transpose(w, (0, 2, 3, 1)).reshape(cout, 9 * cin_pad).astype(dtype)


def _tap_masks(H, W, nb, dtype):
    """(9, nb*HW) validity masks for the 9 taps, built per image (no cross-image leak)."""
    hw = H * W
    hh = jnp.arange(hw, dtype=jnp.int32) // W
    ww = jnp.arange(hw, dtype=jnp.int32) % W
    rows = []
    for dy in (-1, 0, 1):
        for dx in (-1, 0, 1):
            rows.append((hh + dy >= 0) & (hh + dy < H) & (ww + dx >= 0) & (ww + dx < W))
    m = jnp.stack(rows, axis=0).astype(dtype)                # (9, HW)
    return jnp.tile(m, (1, nb))                              # (9, nb*HW)


@functools.partial(jax.jit, static_argnames=("mxu_dtype", "images_per_step"))
def res_se_block(x, params, *, mxu_dtype=jnp.float32, images_per_step=None):
    """x: (N, Cin, H, W) NCHW (PyTorch convention).  Returns (N, Cout, H, W).

    mxu_dtype=jnp.bfloat16 halves MXU-operand / activation DMA bytes (v6e/v7x);
    accumulation and all elementwise/SE math stay f32.  Default f32 is exact.
    """
    N, Cin, H, W = x.shape
    HW = H * W
    Cout = params["wc1"].shape[0]
    red = params["w_se1"].shape[0]
    has_skip = "w_skip" in params
    Cpad = _round_up(Cin, 8)                 # 8-sublane granule for the x block

    # Images per grid step: amortize the ~0.35us/step pipeline overhead while
    # keeping >= 2 steps when N >= 2 (v7x megacore gets one step per TensorCore).
    if images_per_step is None:
        nb = 1
        for d in range(N, 0, -1):
            if N % d == 0 and (N // d >= 2 or N == 1):
                nb = d
                break
    else:
        assert N % images_per_step == 0
        nb = images_per_step
    L = nb * HW
    if L % 128 != 0 and nb != N:             # lane-block divisibility fallback
        nb, L = N, N * HW

    # ---- fold BN (eval mode) into the convs; flatten weights for im2col matmuls ----
    wc1, bc1 = _fold_bn_into_conv(params["wc1"], params["bn1_gamma"],
                                  params["bn1_beta"], params["bn1_mean"],
                                  params["bn1_var"])
    wc2, bc2 = _fold_bn_into_conv(params["wc2"], params["bn2_gamma"],
                                  params["bn2_beta"], params["bn2_mean"],
                                  params["bn2_var"])
    wc1_f = _flatten_conv_weight(wc1, Cpad, mxu_dtype)       # (Cout, 9*Cpad)
    wc2_f = _flatten_conv_weight(wc2, Cout, mxu_dtype)       # (Cout, 9*Cout)
    bc1_c = bc1.reshape(Cout, 1).astype(jnp.float32)
    bc2_c = bc2.reshape(Cout, 1).astype(jnp.float32)

    w1t = params["w_se1"].T.astype(jnp.float32)              # (Cout, red)
    b1r = params["b_se1"].reshape(1, red).astype(jnp.float32)
    w2 = params["w_se2"].astype(jnp.float32)                 # (Cout, red)
    b2c = params["b_se2"].reshape(Cout, 1).astype(jnp.float32)

    masks = _tap_masks(H, W, nb, mxu_dtype)                  # (9, L)

    # ---- activations: channels-first, batch folded into the lane axis so the
    #      conv matmuls see a wide (nb*HW) lane dimension; Cin zero-padded to 8. ----
    x2 = jnp.transpose(x.reshape(N, Cin, HW), (1, 0, 2)).reshape(Cin, N * HW)
    if Cpad > Cin:
        x2 = jnp.pad(x2, ((0, Cpad - Cin), (0, 0)))
    x2 = x2.astype(mxu_dtype)

    full = lambda i: (0, 0)
    lane_blk = lambda i: (0, i)

    in_specs = [
        pl.BlockSpec((Cpad, L), lane_blk),                   # x (nb images per step)
        pl.BlockSpec((9, L), full),                          # precomputed tap masks
        pl.BlockSpec((Cout, 9 * Cpad), full),                # conv1 (folded, im2col)
        pl.BlockSpec((Cout, 1), full),                       # conv1 bias
        pl.BlockSpec((Cout, 9 * Cout), full),                # conv2 (folded, im2col)
        pl.BlockSpec((Cout, 1), full),                       # conv2 bias
        pl.BlockSpec((Cout, red), full),                     # SE linear1 weight (T)
        pl.BlockSpec((1, red), full),                        # SE linear1 bias
        pl.BlockSpec((Cout, red), full),                     # SE linear2 weight
        pl.BlockSpec((Cout, 1), full),                       # SE linear2 bias
    ]
    args = [x2, masks, wc1_f, bc1_c, wc2_f, bc2_c, w1t, b1r, w2, b2c]
    if has_skip:
        ws = params["w_skip"].astype(mxu_dtype)              # (Cout, Cin)
        if Cpad > Cin:
            ws = jnp.pad(ws, ((0, 0), (0, Cpad - Cin)))
        in_specs.append(pl.BlockSpec((Cout, Cpad), full))    # skip 1x1 weight
        args.append(ws)

    flops = int(2 * N * HW * (9 * Cpad * Cout + 9 * Cout * Cout
                              + (Cpad * Cout if has_skip else 0))
                + 4 * N * Cout * red)
    bytes_accessed = int(x2.dtype.itemsize * Cpad * N * HW
                         + x.dtype.itemsize * Cout * N * HW
                         + wc1_f.dtype.itemsize * 9 * Cout * (Cpad + Cout)
                         + 4 * (4 * Cout + 2 * red))

    kernel = functools.partial(_res_se_block_kernel, W=W, HW=HW, nb=nb,
                               has_skip=has_skip, mxu_dtype=mxu_dtype)

    # TODO(synk): for much larger Cout or H*W, tile the lane (HW) axis with a
    # 1-row halo and re-budget vmem_limit_bytes for v7x's 64 MiB VMEM.
    out_flat = pl.pallas_call(
        kernel,
        out_shape=jax.ShapeDtypeStruct((Cout, N * HW), x.dtype),
        grid_spec=pltpu.PrefetchScalarGridSpec(
            num_scalar_prefetch=0,
            grid=(N // nb,),
            in_specs=in_specs,
            out_specs=pl.BlockSpec((Cout, L), lane_blk),
        ),
        compiler_params=pltpu.CompilerParams(
            dimension_semantics=("parallel",)),
        cost_estimate=pl.CostEstimate(
            flops=flops,
            transcendentals=int(N * (Cout + red)),
            bytes_accessed=bytes_accessed),
    )(*args)

    return jnp.transpose(out_flat.reshape(Cout, N, HW), (1, 0, 2)).reshape(N, Cout, H, W)


# ----------------------------------------------------------------------------
# Pure-JAX reference (eval-mode BN), matches the PyTorch forward.
# ----------------------------------------------------------------------------
def _reference(x, params, eps=1e-5):
    def bn(y, g, b, m, v):
        scale = g / jnp.sqrt(v + eps)
        return y * scale[None, :, None, None] + (b - scale * m)[None, :, None, None]

    dn = ("NCHW", "OIHW", "NCHW")
    y = jax.lax.conv_general_dilated(x, params["wc1"], (1, 1), "SAME",
                                     dimension_numbers=dn)
    y = jnp.maximum(bn(y, params["bn1_gamma"], params["bn1_beta"],
                       params["bn1_mean"], params["bn1_var"]), 0.0)
    y = jax.lax.conv_general_dilated(y, params["wc2"], (1, 1), "SAME",
                                     dimension_numbers=dn)
    y = bn(y, params["bn2_gamma"], params["bn2_beta"],
           params["bn2_mean"], params["bn2_var"])

    s = jnp.mean(y, axis=(2, 3))                                      # (N, Cout)
    z = jnp.maximum(s @ params["w_se1"].T + params["b_se1"], 0.0)     # (N, red)
    e = jax.nn.sigmoid(z @ params["w_se2"].T + params["b_se2"])       # (N, Cout)
    x_se = y * e[:, :, None, None]

    w_skip = params.get("w_skip", None)
    skip = x if w_skip is None else jnp.einsum("oc,nchw->nohw", w_skip, x)
    return jnp.maximum(x_se, 0.0) + skip


def init_params(key, in_channels, out_channels):
    red = max(1, out_channels // 16)
    ks = jax.random.split(key, 9)
    p = {
        "wc1": 0.3 * jax.random.normal(ks[0], (out_channels, in_channels, 3, 3), jnp.float32),
        "bn1_gamma": 1.0 + 0.1 * jax.random.normal(ks[1], (out_channels,), jnp.float32),
        "bn1_beta": 0.05 * jnp.arange(out_channels, dtype=jnp.float32),
        "bn1_mean": 0.1 * jnp.ones((out_channels,), jnp.float32),
        "bn1_var": 1.0 + 0.5 * jnp.arange(out_channels, dtype=jnp.float32) / out_channels,
        "wc2": 0.3 * jax.random.normal(ks[2], (out_channels, out_channels, 3, 3), jnp.float32),
        "bn2_gamma": 1.0 + 0.1 * jax.random.normal(ks[3], (out_channels,), jnp.float32),
        "bn2_beta": -0.05 * jnp.arange(out_channels, dtype=jnp.float32),
        "bn2_mean": -0.1 * jnp.ones((out_channels,), jnp.float32),
        "bn2_var": 1.5 * jnp.ones((out_channels,), jnp.float32),
        "w_se1": 0.5 * jax.random.normal(ks[4], (red, out_channels), jnp.float32),
        "b_se1": 0.1 * jax.random.normal(ks[5], (red,), jnp.float32),
        "w_se2": 0.5 * jax.random.normal(ks[6], (out_channels, red), jnp.float32),
        "b_se2": 0.1 * jax.random.normal(ks[7], (out_channels,), jnp.float32),
    }
    if in_channels != out_channels:
        p["w_skip"] = 0.3 * jax.random.normal(ks[8], (out_channels, in_channels), jnp.float32)
    return p


if __name__ == "__main__":
    key = jax.random.PRNGKey(0)
    k_x, k_p, k_x2, k_p2 = jax.random.split(key, 4)

    N, H, W = 2, 16, 16

    # Case 1: in != out -> exercises the 1x1 skip conv path.
    x = jax.random.normal(k_x, (N, 4, H, W), jnp.float32)
    params = init_params(k_p, 4, 8)
    ref = _reference(x, params)
    out = jax.block_until_ready(res_se_block(x, params))
    assert out.shape == (N, 8, H, W)
    assert jnp.allclose(out, ref, atol=1e-4, rtol=1e-4), "f32 mismatch (skip-conv case)"

    # bf16 MXU operands (v6e/v7x fast path): f32 accumulation, loose tolerance.
    out_bf16 = jax.block_until_ready(res_se_block(x, params, mxu_dtype=jnp.bfloat16))
    assert jnp.allclose(out_bf16, ref, atol=2e-1, rtol=2e-1), "bf16 mismatch (skip-conv case)"

    # Case 2: in == out -> exercises the identity-skip (plain add, no eye matmul).
    x_id = jax.random.normal(k_x2, (N, 8, H, W), jnp.float32)
    params_id = init_params(k_p2, 8, 8)
    ref_id = _reference(x_id, params_id)
    out_id = jax.block_until_ready(res_se_block(x_id, params_id))
    assert out_id.shape == (N, 8, H, W)
    assert jnp.allclose(out_id, ref_id, atol=1e-4, rtol=1e-4), "f32 mismatch (identity-skip case)"

    print("KERNEL_OK")
</pallas_src>

<mosaic_0001>
module attributes {stable_mosaic.version = 11 : i64} {
  func.func @_res_se_block_kernel(%arg0: i32, %arg1: memref<8x256xf32, #tpu.memory_space<vmem>>, %arg2: memref<9x256xf32, #tpu.memory_space<vmem>>, %arg3: memref<8x72xf32, #tpu.memory_space<vmem>>, %arg4: memref<8x1xf32, #tpu.memory_space<vmem>>, %arg5: memref<8x72xf32, #tpu.memory_space<vmem>>, %arg6: memref<8x1xf32, #tpu.memory_space<vmem>>, %arg7: memref<8x1xf32, #tpu.memory_space<vmem>>, %arg8: memref<1x1xf32, #tpu.memory_space<vmem>>, %arg9: memref<8x1xf32, #tpu.memory_space<vmem>>, %arg10: memref<8x1xf32, #tpu.memory_space<vmem>>, %arg11: memref<8x8xf32, #tpu.memory_space<vmem>>, %arg12: memref<8x256xf32, #tpu.memory_space<vmem>>) attributes {dimension_semantics = [#tpu.dimension_semantics<parallel>], iteration_bounds = array<i64: 2>, scalar_prefetch = 0 : i64, scratch_operands = 0 : i64, tpu.core_type = #tpu.core_type<tc>, window_params = [{transform_indices = @transform_0, window_bounds = array<i64: 8, 256>}, {pipeline_mode = #tpu.pipeline_mode<synchronous>, transform_indices = @transform_1, window_bounds = array<i64: 9, 256>}, {pipeline_mode = #tpu.pipeline_mode<synchronous>, transform_indices = @transform_2, window_bounds = array<i64: 8, 72>}, {pipeline_mode = #tpu.pipeline_mode<synchronous>, transform_indices = @transform_3, window_bounds = array<i64: 8, 1>}, {pipeline_mode = #tpu.pipeline_mode<synchronous>, transform_indices = @transform_4, window_bounds = array<i64: 8, 72>}, {pipeline_mode = #tpu.pipeline_mode<synchronous>, transform_indices = @transform_5, window_bounds = array<i64: 8, 1>}, {pipeline_mode = #tpu.pipeline_mode<synchronous>, transform_indices = @transform_6, window_bounds = array<i64: 8, 1>}, {pipeline_mode = #tpu.pipeline_mode<synchronous>, transform_indices = @transform_7, window_bounds = array<i64: 1, 1>}, {pipeline_mode = #tpu.pipeline_mode<synchronous>, transform_indices = @transform_8, window_bounds = array<i64: 8, 1>}, {pipeline_mode = #tpu.pipeline_mode<synchronous>, transform_indices = @transform_9, window_bounds = array<i64: 8, 1>}, {pipeline_mode = #tpu.pipeline_mode<synchronous>, transform_indices = @transform_10, window_bounds = array<i64: 8, 8>}, {transform_indices = @transform_11, window_bounds = array<i64: 8, 256>}]} {
    %c0 = arith.constant 0 : index
    %c0_0 = arith.constant 0 : index
    %0 = vector.load %arg1[%c0, %c0_0] : memref<8x256xf32, #tpu.memory_space<vmem>>, vector<8x256xf32>
    %c0_1 = arith.constant 0 : index
    %c0_2 = arith.constant 0 : index
    %1 = vector.load %arg2[%c0_1, %c0_2] : memref<9x256xf32, #tpu.memory_space<vmem>>, vector<1x256xf32>
    %c1 = arith.constant 1 : index
    %c0_3 = arith.constant 0 : index
    %2 = vector.load %arg2[%c1, %c0_3] : memref<9x256xf32, #tpu.memory_space<vmem>>, vector<1x256xf32>
    %c2 = arith.constant 2 : index
    %c0_4 = arith.constant 0 : index
    %3 = vector.load %arg2[%c2, %c0_4] : memref<9x256xf32, #tpu.memory_space<vmem>>, vector<1x256xf32>
    %c3 = arith.constant 3 : index
    %c0_5 = arith.constant 0 : index
    %4 = vector.load %arg2[%c3, %c0_5] : memref<9x256xf32, #tpu.memory_space<vmem>>, vector<1x256xf32>
    %c4 = arith.constant 4 : index
    %c0_6 = arith.constant 0 : index
    %5 = vector.load %arg2[%c4, %c0_6] : memref<9x256xf32, #tpu.memory_space<vmem>>, vector<1x256xf32>
    %c5 = arith.constant 5 : index
    %c0_7 = arith.constant 0 : index
    %6 = vector.load %arg2[%c5, %c0_7] : memref<9x256xf32, #tpu.memory_space<vmem>>, vector<1x256xf32>
    %c6 = arith.constant 6 : index
    %c0_8 = arith.constant 0 : index
    %7 = vector.load %arg2[%c6, %c0_8] : memref<9x256xf32, #tpu.memory_space<vmem>>, vector<1x256xf32>
    %c7 = arith.constant 7 : index
    %c0_9 = arith.constant 0 : index
    %8 = vector.load %arg2[%c7, %c0_9] : memref<9x256xf32, #tpu.memory_space<vmem>>, vector<1x256xf32>
    %c8 = arith.constant 8 : index
    %c0_10 = arith.constant 0 : index
    %9 = vector.load %arg2[%c8, %c0_10] : memref<9x256xf32, #tpu.memory_space<vmem>>, vector<1x256xf32>
    %c17_i32 = arith.constant 17 : i32
    %10 = tpu.dynamic_rotate %0 by %c17_i32 dim 1 : vector<8x256xf32>, i32 -> vector<8x256xf32>
    %11 = vector.broadcast %1 : vector<1x256xf32> to vector<8x256xf32>
    %12 = arith.mulf %10, %11 : vector<8x256xf32>
    %c16_i32 = arith.constant 16 : i32
    %13 = tpu.dynamic_rotate %0 by %c16_i32 dim 1 : vector<8x256xf32>, i32 -> vector<8x256xf32>
    %14 = vector.broadcast %2 : vector<1x256xf32> to vector<8x256xf32>
    %15 = arith.mulf %13, %14 : vector<8x256xf32>
    %c15_i32 = arith.constant 15 : i32
    %16 = tpu.dynamic_rotate %0 by %c15_i32 dim 1 : vector<8x256xf32>, i32 -> vector<8x256xf32>
    %17 = vector.broadcast %3 : vector<1x256xf32> to vector<8x256xf32>
    %18 = arith.mulf %16, %17 : vector<8x256xf32>
    %c1_i32 = arith.constant 1 : i32
    %19 = tpu.dynamic_rotate %0 by %c1_i32 dim 1 : vector<8x256xf32>, i32 -> vector<8x256xf32>
    %20 = vector.broadcast %4 : vector<1x256xf32> to vector<8x256xf32>
    %21 = arith.mulf %19, %20 : vector<8x256xf32>
    %22 = vector.broadcast %5 : vector<1x256xf32> to vector<8x256xf32>
    %23 = arith.mulf %0, %22 : vector<8x256xf32>
    %c255_i32 = arith.constant 255 : i32
    %24 = tpu.dynamic_rotate %0 by %c255_i32 dim 1 : vector<8x256xf32>, i32 -> vector<8x256xf32>
    %25 = vector.broadcast %6 : vector<1x256xf32> to vector<8x256xf32>
    %26 = arith.mulf %24, %25 : vector<8x256xf32>
    %c241_i32 = arith.constant 241 : i32
    %27 = tpu.dynamic_rotate %0 by %c241_i32 dim 1 : vector<8x256xf32>, i32 -> vector<8x256xf32>
    %28 = vector.broadcast %7 : vector<1x256xf32> to vector<8x256xf32>
    %29 = arith.mulf %27, %28 : vector<8x256xf32>
    %c240_i32 = arith.constant 240 : i32
    %30 = tpu.dynamic_rotate %0 by %c240_i32 dim 1 : vector<8x256xf32>, i32 -> vector<8x256xf32>
    %31 = vector.broadcast %8 : vector<1x256xf32> to vector<8x256xf32>
    %32 = arith.mulf %30, %31 : vector<8x256xf32>
    %c239_i32 = arith.constant 239 : i32
    %33 = tpu.dynamic_rotate %0 by %c239_i32 dim 1 : vector<8x256xf32>, i32 -> vector<8x256xf32>
    %34 = vector.broadcast %9 : vector<1x256xf32> to vector<8x256xf32>
    %35 = arith.mulf %33, %34 : vector<8x256xf32>
    %36 = tpu.concatenate %12, %15, %18, %21, %23, %26, %29, %32, %35 in 0 : vector<8x256xf32>, vector<8x256xf32>, vector<8x256xf32>, vector<8x256xf32>, vector<8x256xf32>, vector<8x256xf32>, vector<8x256xf32>, vector<8x256xf32>, vector<8x256xf32> -> vector<72x256xf32>
    %c0_11 = arith.constant 0 : index
    %c0_12 = arith.constant 0 : index
    %37 = vector.load %arg3[%c0_11, %c0_12] : memref<8x72xf32, #tpu.memory_space<vmem>>, vector<8x72xf32>
    %cst = arith.constant dense<0.000000e+00> : vector<8x256xf32>
    %38 = tpu.matmul %37, %36, %cst {dimension_numbers = #tpu.dot_dimension_numbers<[1], [0], [0], [1], [0, 0, 1, 1], [], []>} : vector<8x72xf32>, vector<72x256xf32>, vector<8x256xf32> -> vector<8x256xf32>
    %c0_13 = arith.constant 0 : index
    %c0_14 = arith.constant 0 : index
    %39 = vector.load %arg4[%c0_13, %c0_14] : memref<8x1xf32, #tpu.memory_space<vmem>>, vector<8x1xf32>
    %40 = vector.broadcast %39 : vector<8x1xf32> to vector<8x256xf32>
    %41 = arith.addf %38, %40 : vector<8x256xf32>
    %cst_15 = arith.constant 0.000000e+00 : f32
    %42 = vector.broadcast %cst_15 : f32 to vector<8x256xf32>
    %43 = arith.maximumf %41, %42 : vector<8x256xf32>
    %c17_i32_16 = arith.constant 17 : i32
    %44 = tpu.dynamic_rotate %43 by %c17_i32_16 dim 1 : vector<8x256xf32>, i32 -> vector<8x256xf32>
    %45 = vector.broadcast %1 : vector<1x256xf32> to vector<8x256xf32>
    %46 = arith.mulf %44, %45 : vector<8x256xf32>
    %c16_i32_17 = arith.constant 16 : i32
    %47 = tpu.dynamic_rotate %43 by %c16_i32_17 dim 1 : vector<8x256xf32>, i32 -> vector<8x256xf32>
    %48 = vector.broadcast %2 : vector<1x256xf32> to vector<8x256xf32>
    %49 = arith.mulf %47, %48 : vector<8x256xf32>
    %c15_i32_18 = arith.constant 15 : i32
    %50 = tpu.dynamic_rotate %43 by %c15_i32_18 dim 1 : vector<8x256xf32>, i32 -> vector<8x256xf32>
    %51 = vector.broadcast %3 : vector<1x256xf32> to vector<8x256xf32>
    %52 = arith.mulf %50, %51 : vector<8x256xf32>
    %c1_i32_19 = arith.constant 1 : i32
    %53 = tpu.dynamic_rotate %43 by %c1_i32_19 dim 1 : vector<8x256xf32>, i32 -> vector<8x256xf32>
    %54 = vector.broadcast %4 : vector<1x256xf32> to vector<8x256xf32>
    %55 = arith.mulf %53, %54 : vector<8x256xf32>
    %56 = vector.broadcast %5 : vector<1x256xf32> to vector<8x256xf32>
    %57 = arith.mulf %43, %56 : vector<8x256xf32>
    %c255_i32_20 = arith.constant 255 : i32
    %58 = tpu.dynamic_rotate %43 by %c255_i32_20 dim 1 : vector<8x256xf32>, i32 -> vector<8x256xf32>
    %59 = vector.broadcast %6 : vector<1x256xf32> to vector<8x256xf32>
    %60 = arith.mulf %58, %59 : vector<8x256xf32>
    %c241_i32_21 = arith.constant 241 : i32
    %61 = tpu.dynamic_rotate %43 by %c241_i32_21 dim 1 : vector<8x256xf32>, i32 -> vector<8x256xf32>
    %62 = vector.broadcast %7 : vector<1x256xf32> to vector<8x256xf32>
    %63 = arith.mulf %61, %62 : vector<8x256xf32>
    %c240_i32_22 = arith.constant 240 : i32
    %64 = tpu.dynamic_rotate %43 by %c240_i32_22 dim 1 : vector<8x256xf32>, i32 -> vector<8x256xf32>
    %65 = vector.broadcast %8 : vector<1x256xf32> to vector<8x256xf32>
    %66 = arith.mulf %64, %65 : vector<8x256xf32>
    %c239_i32_23 = arith.constant 239 : i32
    %67 = tpu.dynamic_rotate %43 by %c239_i32_23 dim 1 : vector<8x256xf32>, i32 -> vector<8x256xf32>
    %68 = vector.broadcast %9 : vector<1x256xf32> to vector<8x256xf32>
    %69 = arith.mulf %67, %68 : vector<8x256xf32>
    %70 = tpu.concatenate %46, %49, %52, %55, %57, %60, %63, %66, %69 in 0 : vector<8x256xf32>, vector<8x256xf32>, vector<8x256xf32>, vector<8x256xf32>, vector<8x256xf32>, vector<8x256xf32>, vector<8x256xf32>, vector<8x256xf32>, vector<8x256xf32> -> vector<72x256xf32>
    %c0_24 = arith.constant 0 : index
    %c0_25 = arith.constant 0 : index
    %71 = vector.load %arg5[%c0_24, %c0_25] : memref<8x72xf32, #tpu.memory_space<vmem>>, vector<8x72xf32>
    %cst_26 = arith.constant dense<0.000000e+00> : vector<8x256xf32>
    %72 = tpu.matmul %71, %70, %cst_26 {dimension_numbers = #tpu.dot_dimension_numbers<[1], [0], [0], [1], [0, 0, 1, 1], [], []>} : vector<8x72xf32>, vector<72x256xf32>, vector<8x256xf32> -> vector<8x256xf32>
    %c0_27 = arith.constant 0 : index
    %c0_28 = arith.constant 0 : index
    %73 = vector.load %arg6[%c0_27, %c0_28] : memref<8x1xf32, #tpu.memory_space<vmem>>, vector<8x1xf32>
    %74 = vector.broadcast %73 : vector<8x1xf32> to vector<8x256xf32>
    %75 = arith.addf %72, %74 : vector<8x256xf32>
    %c0_29 = arith.constant 0 : index
    %c0_30 = arith.constant 0 : index
    %76 = vector.load %arg11[%c0_29, %c0_30] : memref<8x8xf32, #tpu.memory_space<vmem>>, vector<8x8xf32>
    %cst_31 = arith.constant dense<0.000000e+00> : vector<8x256xf32>
    %77 = tpu.matmul %76, %0, %cst_31 {dimension_numbers = #tpu.dot_dimension_numbers<[1], [0], [0], [1], [0, 0, 1, 1], [], []>} : vector<8x8xf32>, vector<8x256xf32>, vector<8x256xf32> -> vector<8x256xf32>
    %c0_32 = arith.constant 0 : index
    %c0_33 = arith.constant 0 : index
    %78 = vector.load %arg7[%c0_32, %c0_33] : memref<8x1xf32, #tpu.memory_space<vmem>>, vector<8x1xf32>
    %c0_34 = arith.constant 0 : index
    %c0_35 = arith.constant 0 : index
    %79 = vector.load %arg8[%c0_34, %c0_35] : memref<1x1xf32, #tpu.memory_space<vmem>>, vector<1x1xf32>
    %c0_36 = arith.constant 0 : index
    %c0_37 = arith.constant 0 : index
    %80 = vector.load %arg9[%c0_36, %c0_37] : memref<8x1xf32, #tpu.memory_space<vmem>>, vector<8x1xf32>
    %c0_38 = arith.constant 0 : index
    %c0_39 = arith.constant 0 : index
    %81 = vector.load %arg10[%c0_38, %c0_39] : memref<8x1xf32, #tpu.memory_space<vmem>>, vector<8x1xf32>
    %cst_40 = arith.constant dense<0.000000e+00> : vector<8xf32>
    %82 = vector.multi_reduction <add>, %75, %cst_40 [1] : vector<8x256xf32> to vector<8xf32>
    %83 = vector.shape_cast %82 : vector<8xf32> to vector<8x1xf32>
    %cst_41 = arith.constant 2.560000e+02 : f32
    %84 = vector.broadcast %cst_41 : f32 to vector<8x1xf32>
    %85 = arith.divf %83, %84 : vector<8x1xf32>
    %86 = arith.mulf %78, %85 : vector<8x1xf32>
    %cst_42 = arith.constant dense<0.000000e+00> : vector<1xf32>
    %87 = vector.multi_reduction <add>, %86, %cst_42 [0] : vector<8x1xf32> to vector<1xf32>
    %88 = vector.shape_cast %87 : vector<1xf32> to vector<1x1xf32>
    %89 = arith.addf %88, %79 : vector<1x1xf32>
    %cst_43 = arith.constant 0.000000e+00 : f32
    %90 = vector.broadcast %cst_43 : f32 to vector<1x1xf32>
    %91 = arith.maximumf %89, %90 : vector<1x1xf32>
    %92 = vector.broadcast %91 : vector<1x1xf32> to vector<8x1xf32>
    %93 = arith.mulf %80, %92 : vector<8x1xf32>
    %cst_44 = arith.constant dense<0.000000e+00> : vector<8xf32>
    %94 = vector.multi_reduction <add>, %93, %cst_44 [1] : vector<8x1xf32> to vector<8xf32>
    %95 = vector.shape_cast %94 : vector<8xf32> to vector<8x1xf32>
    %96 = arith.addf %95, %81 : vector<8x1xf32>
    %97 = arith.negf %96 : vector<8x1xf32>
    %98 = math.exp %97 : vector<8x1xf32>
    %cst_45 = arith.constant 1.000000e+00 : f32
    %99 = vector.broadcast %cst_45 : f32 to vector<8x1xf32>
    %100 = arith.addf %99, %98 : vector<8x1xf32>
    %101 = arith.divf %99, %100 : vector<8x1xf32>
    %102 = vector.broadcast %101 : vector<8x1xf32> to vector<8x256xf32>
    %103 = arith.mulf %75, %102 : vector<8x256xf32>
    %cst_46 = arith.constant 0.000000e+00 : f32
    %104 = vector.broadcast %cst_46 : f32 to vector<8x256xf32>
    %105 = arith.maximumf %103, %104 : vector<8x256xf32>
    %106 = arith.addf %105, %77 : vector<8x256xf32>
    %c0_47 = arith.constant 0 : index
    %c0_48 = arith.constant 0 : index
    %107 = vector.load %arg12[%c0_47, %c0_48] : memref<8x256xf32, #tpu.memory_space<vmem>>, vector<8x256xf32>
    tpu.vector_store %arg12[%c0_47, %c0_48], %106 {strides = array<i32>} : memref<8x256xf32, #tpu.memory_space<vmem>>, vector<8x256xf32>,
    return
  }
  func.func @transform_0(%arg0: i32) -> (i32, i32) {
    %c0_i32 = arith.constant 0 : i32
    %c0_i32_0 = arith.constant 0 : i32
    return %c0_i32, %arg0 : i32, i32
  }
  func.func @transform_1(%arg0: i32) -> (i32, i32) {
    %c0_i32 = arith.constant 0 : i32
    %c0_i32_0 = arith.constant 0 : i32
    %c0_i32_1 = arith.constant 0 : i32
    return %c0_i32, %c0_i32_0 : i32, i32
  }
  func.func @transform_2(%arg0: i32) -> (i32, i32) {
    %c0_i32 = arith.constant 0 : i32
    %c0_i32_0 = arith.constant 0 : i32
    %c0_i32_1 = arith.constant 0 : i32
    return %c0_i32, %c0_i32_0 : i32, i32
  }
  func.func @transform_3(%arg0: i32) -> (i32, i32) {
    %c0_i32 = arith.constant 0 : i32
    %c0_i32_0 = arith.constant 0 : i32
    %c0_i32_1 = arith.constant 0 : i32
    return %c0_i32, %c0_i32_0 : i32, i32
  }
  func.func @transform_4(%arg0: i32) -> (i32, i32) {
    %c0_i32 = arith.constant 0 : i32
    %c0_i32_0 = arith.constant 0 : i32
    %c0_i32_1 = arith.constant 0 : i32
    return %c0_i32, %c0_i32_0 : i32, i32
  }
  func.func @transform_5(%arg0: i32) -> (i32, i32) {
    %c0_i32 = arith.constant 0 : i32
    %c0_i32_0 = arith.constant 0 : i32
    %c0_i32_1 = arith.constant 0 : i32
    return %c0_i32, %c0_i32_0 : i32, i32
  }
  func.func @transform_6(%arg0: i32) -> (i32, i32) {
    %c0_i32 = arith.constant 0 : i32
    %c0_i32_0 = arith.constant 0 : i32
    %c0_i32_1 = arith.constant 0 : i32
    return %c0_i32, %c0_i32_0 : i32, i32
  }
  func.func @transform_7(%arg0: i32) -> (i32, i32) {
    %c0_i32 = arith.constant 0 : i32
    %c0_i32_0 = arith.constant 0 : i32
    %c0_i32_1 = arith.constant 0 : i32
    return %c0_i32, %c0_i32_0 : i32, i32
  }
  func.func @transform_8(%arg0: i32) -> (i32, i32) {
    %c0_i32 = arith.constant 0 : i32
    %c0_i32_0 = arith.constant 0 : i32
    %c0_i32_1 = arith.constant 0 : i32
    return %c0_i32, %c0_i32_0 : i32, i32
  }
  func.func @transform_9(%arg0: i32) -> (i32, i32) {
    %c0_i32 = arith.constant 0 : i32
    %c0_i32_0 = arith.constant 0 : i32
    %c0_i32_1 = arith.constant 0 : i32
    return %c0_i32, %c0_i32_0 : i32, i32
  }
  func.func @transform_10(%arg0: i32) -> (i32, i32) {
    %c0_i32 = arith.constant 0 : i32
    %c0_i32_0 = arith.constant 0 : i32
    %c0_i32_1 = arith.constant 0 : i32
    return %c0_i32, %c0_i32_0 : i32, i32
  }
  func.func @transform_11(%arg0: i32) -> (i32, i32) {
    %c0_i32 = arith.constant 0 : i32
    %c0_i32_0 = arith.constant 0 : i32
    return %c0_i32, %arg0 : i32, i32
  }
}

</mosaic_0001>

<bundles_post_ra>
// kernel: res_se_block.1
= control target key start
LH: loop header
LB: loop body
LE: loop exit
PB: predicated region body
PF: predicated region fallthrough
CT: control target
= control target key end

     0   :  { %s998_s19 = smov 0   ;;  %s1315_s0 = inlined_call_operand.vmem [shape: f32[8,512], index: 0, kind: input, shape index: {}]   ;;  %s1316_s1 = inlined_call_operand.vmem [shape: f32[9,256], index: 1, kind: input, shape index: {}]   ;;  %s1317_s2 = inlined_call_operand.vmem [shape: f32[8,72], index: 2, kind: input, shape index: {}]   ;;  %s1318_s3 = inlined_call_operand.vmem [shape: f32[8,1], index: 3, kind: input, shape index: {}]   ;;  %s1319_s4 = inlined_call_operand.vmem [shape: f32[8,72], index: 4, kind: input, shape index: {}]   ;;  %s1320_s5 = inlined_call_operand.vmem [shape: f32[8,1], index: 5, kind: input, shape index: {}]   ;;  %s1321_s6 = inlined_call_operand.vmem [shape: f32[8,1], index: 6, kind: input, shape index: {}]   ;;  %s1322_s7 = inlined_call_operand.<no memory space> [shape: f32[1,1], index: 7, kind: input, shape index: {}]   ;;  %s1323_s8 = inlined_call_operand.vmem [shape: f32[8,1], index: 8, kind: input, shape index: {}]   ;;  %s1324_s9 = inlined_call_operand.vmem [shape: f32[8,1], index: 9, kind: input, shape index: {}]   ;;  %s1325_s10 = inlined_call_operand.vmem [shape: f32[8,8], index: 10, kind: input, shape index: {}]   ;;  %s1326_s11 = inlined_call_operand.vmem [shape: f32[8,512], index: 11, kind: output, shape index: {}]  }
   0x1   :  { %v16_v0 = vstv %s1322_s7 }
   0x2   :  { %17 = vst [vmem:[#allocation2] sm:$0x1] %v16_v0 }
   0x3 LB: > { %s864_s20 = sadd.s32 4294967295, %s923_s19   ;;  %p868_p0 = scmp.ge.s32.totalorder %s923_s19, 1  ;;  %s923_s19 = sphi %s998_s19, %s23_s19  }
   0x4   : > { %p340_p1 = scmp.lt.s32.totalorder %s923_s19, 3 }
   0x6   : > { %p341_p2 = pnand %p868_p0, %p340_p1 }
   0x7   : > { %s869_s21 = sshll.u32 (!%p341_p2), %s864_s20, 1  ;;  %s925_s25 = smov (!%p341_p2), 112  }
   0x8   : > { %344 = sbr.rel (%p341_p2) target bundleno = 865 (0x361), region = 64  ;;  %p381_p3 = scmp.lt.s32.totalorder (!%p341_p2), %s869_s21, 3 }
   0x9   : > { %s926_s26 = smov (!%p341_p2), 111   ;;  %s927_s27 = smov (!%p341_p2), 113  }
   0xa   : > { %s928_s28 = smov (!%p341_p2), 127   ;;  %s929_s29 = smov (!%p341_p2), 1  }
   0xb   : > { %s930_s30 = smov (!%p341_p2), 15   ;;  %s931_s12 = smov (!%p341_p2), 16  }
   0xc   : > { %s932_s13 = smov (!%p341_p2), 17  }
   0xd   : > { %s1328_s21 = smov (!%p381_p3, %s869_s21), 3  ;;  %v415_v4 = vlaneseq  ;;  %v1055_v8 = vld [vmem:[%s1316_s1 + $0x10] ss:$8 sm:$0x3]  ;;  %v533_v39 = vld [vmem:[%s1318_s3] sm:$0xff]  ;;  %v933_v40 = vmov 0  }
   0xe   : > { %s870_s7 = sshll.u32 %s1328_s21, 3  ;;  %v1060_v10 = vld [vmem:[%s1316_s1 + $0x7] ss:$8 sm:$0x3]  ;;  %v526_v11 = vperm.slane %v1055_v8, 0  ;;  %v527_v12 = vperm.slane %v1055_v8, 1  ;;  %908 = vset.pattern.permute.xlu1 %v933_v40  ;;  %909 = vset.pattern.permute.xlu0 %v933_v40 }
   0xf   : > { %s384_s24 = scalar_lea.vmem %s1315_s0, %s870_s7  ;;  %v1050_v7 = vand.u32 127, %v415_v4  ;;  %v1069_v13 = vld [vmem:[%s1316_s1 + $0x6] ss:$8 sm:$0x3]  ;;  %v512_v16 = vperm.slane %v1060_v10, 0  ;;  %v513_v17 = vperm.slane %v1060_v10, 1  ;;  %910 = vset.pattern.permute.xlu2 %v933_v40  ;;  %s390_s15 = scalar_lea.vmem %s1326_s11, %s870_s7 }
  0x10   : > { %v1014_v1 = vld [vmem:[%s384_s24] sm:$0xff]  ;;  %v1022_v2 = vld [vmem:[%s384_s24 + $0x8] sm:$0xff]  ;;  %v498_v24 = vperm.slane %v1069_v13, 0  ;;  %v499_v25 = vperm.slane %v1069_v13, 1  ;;  %vm539_vm8 = vcmask 588800   ;;  %vm702_vm9 = vcmask 64512  }
  0x11   : > { %504 = vrot.lane.b32.xlu1 %v1014_v1, %s925_s25  ;;  %518 = vrot.lane.b32.xlu0 %v1014_v1, %s926_s26  ;;  %vm508_vm0 = vcmp.lt.s32.totalorder %v1050_v7, 112  ;;  %vm522_vm1 = vcmp.lt.s32.totalorder %v1050_v7, 111  ;;  %vm494_vm2 = vcmp.lt.s32.totalorder %v1050_v7, 113  ;;  %v1091_v26 = vld [vmem:[%s1316_s1 + $0x5] ss:$8 sm:$0x3] }
  0x12   : > { %490 = vrot.lane.b32.xlu2 %v1014_v1, %s927_s27  ;;  %v1100_v29 = vld [vmem:[%s1316_s1 + $0x4] ss:$8 sm:$0x3]  ;;  %vm480_vm3 = vcmp.lt.s32.totalorder %v1050_v7, 127  ;;  %v484_v33 = vperm.slane %v1091_v26, 0  ;;  %v485_v34 = vperm.slane %v1091_v26, 1 }
  0x13   : > { %v470_v37 = vperm.slane %v1100_v29, 0  ;;  %v471_v38 = vperm.slane %v1100_v29, 1  ;;  %v1135_v49 = vld [vmem:[%s1316_s1 + $0x3] ss:$8 sm:$0x3]  ;;  %vm459_vm4 = vcmp.lt.s32.totalorder %v1050_v7, 1 }
  0x14   : > { %v1140_v50 = vld [vmem:[%s1316_s1 + $0x2] ss:$8 sm:$0x3]  ;;  %v463_v51 = vperm.slane %v1135_v49, 0  ;;  %v464_v52 = vperm.slane %v1135_v49, 1  ;;  %vm445_vm5 = vcmp.lt.s32.totalorder %v1050_v7, 15 }
  0x15   : > { %v474_v47 = vmul.f32 %v470_v37, %v1014_v1  ;;  %v475_v48 = vmul.f32 %v471_v38, %v1022_v2  ;;  %v449_v54 = vperm.slane %v1140_v50, 0  ;;  %v450_v55 = vperm.slane %v1140_v50, 1  ;;  %v1167_v4 = vld [vmem:[%s1316_s1 + $0x1] ss:$8 sm:$0x3] }
  0x16   : > { %vm431_vm6 = vcmp.lt.s32.totalorder %v1050_v7, 16  ;;  %vm417_vm7 = vcmp.lt.s32.totalorder %v1050_v7, 17  ;;  %vm762_vm11 = vcmask 7168  }
  0x19   : > { %506 = vrot.lane.b32.xlu1 %v1022_v2, %s925_s25  ;;  %520 = vrot.lane.b32.xlu0 %v1022_v2, %s926_s26 }
  0x1a   : > { %492 = vrot.lane.b32.xlu2 %v1022_v2, %s927_s27 }
  0x21   : > { %478 = vrot.lane.b32.xlu1 %v1022_v2, %s928_s28  ;;  %476 = vrot.lane.b32.xlu0 %v1014_v1, %s928_s28 }
  0x22   : > { %455 = vrot.lane.b32.xlu2 %v1014_v1, %s929_s29 }
  0x29   : > { %441 = vrot.lane.b32.xlu1 %v1014_v1, %s930_s30  ;;  %457 = vrot.lane.b32.xlu0 %v1022_v2, %s929_s29 }
  0x2a   : > { %443 = vrot.lane.b32.xlu2 %v1022_v2, %s930_s30 }
  0x31   : > { %429 = vrot.lane.b32.xlu1 %v1022_v2, %s931_s12  ;;  %427 = vrot.lane.b32.xlu0 %v1014_v1, %s931_s12 }
  0x32   : > { %411 = vrot.lane.b32.xlu2 %v1014_v1, %s932_s13 }
  0x39   : > { %413 = vrot.lane.b32.xlu0 %v1022_v2, %s932_s13  ;;  %536 = vperm.xlu1 %908, %v533_v39  }
  0x6c   : > { %v491_v3 = vpop.permute.xlu2 %490 }
  0x74   : > { %v493_v9 = vpop.permute.xlu2 %492 }
  0x75   : > { %v495_v27 = vsel %vm494_vm2, %v491_v3, %v493_v9  ;;  %v496_v28 = vsel %vm494_vm2, %v493_v9, %v491_v3 }
  0x76   : > { %v502_v35 = vmul.f32 %v498_v24, %v495_v27  ;;  %v503_v36 = vmul.f32 %v499_v25, %v496_v28 }
  0x7c   : > { %v456_v32 = vpop.permute.xlu2 %455 }
  0x83   : > { %v505_v5 = vpop.permute.xlu1 %504  ;;  %v519_v6 = vpop.permute.xlu0 %518 }
  0x84   : > { %v444_v53 = vpop.permute.xlu2 %443 }
  0x8b   : > { %v507_v14 = vpop.permute.xlu1 %506  ;;  %v521_v15 = vpop.permute.xlu0 %520 }
  0x8c   : > { %v509_v18 = vsel %vm508_vm0, %v505_v5, %v507_v14  ;;  %v510_v19 = vsel %vm508_vm0, %v507_v14, %v505_v5  ;;  %v523_v20 = vsel %vm522_vm1, %v519_v6, %v521_v15  ;;  %v524_v21 = vsel %vm522_vm1, %v521_v15, %v519_v6 }
  0x8d   : > { %v530_v22 = vmul.f32 %v526_v11, %v523_v20  ;;  %v531_v23 = vmul.f32 %v527_v12, %v524_v21  ;;  %v516_v30 = vmul.f32 %v512_v16, %v509_v18  ;;  %v517_v31 = vmul.f32 %v513_v17, %v510_v19  ;;  %v1183_v21 = vld [vmem:[%s1316_s1] ss:$8 sm:$0x3] }
  0x8e   : > { %v435_v5 = vperm.slane %v1167_v4, 0  ;;  %v436_v6 = vperm.slane %v1167_v4, 1  ;;  %v422_v27 = vperm.slane %v1183_v21, 1 }
  0x8f   : > { %550 = vmatpush.msra.mxu0 %v530_v22  ;;  %570 = vmatpush.msra.mxu1 %v531_v23  ;;  %v412_v22 = vpop.permute.xlu2 %411  ;;  %v421_v23 = vperm.slane %v1183_v21, 0 }
  0x91   : > { %551 = vmatpush.msra.mxu0 %v516_v30  ;;  %571 = vmatpush.msra.mxu1 %v517_v31 }
  0x93   : > { %v479_v41 = vpop.permute.xlu1 %478  ;;  %552 = vmatpush.msra.mxu0 %v502_v35  ;;  %572 = vmatpush.msra.mxu1 %v503_v36  ;;  %v477_v42 = vpop.permute.xlu0 %476  ;;  %v532_v36 = vld [vmem:[%s1317_s2] sm:$0xff] }
  0x94   : > { %v481_v43 = vsel %vm480_vm3, %v477_v42, %v479_v41  ;;  %v482_v44 = vsel %vm480_vm3, %v479_v41, %v477_v42 }
  0x95   : > { %v488_v45 = vmul.f32 %v484_v33, %v481_v43  ;;  %v489_v46 = vmul.f32 %v485_v34, %v482_v44 }
  0x97   : > { %553 = vmatpush.msra.mxu0 %v488_v45  ;;  %573 = vmatpush.msra.mxu1 %v489_v46 }
  0x99   : > { %554 = vmatpush.msra.mxu0 %v474_v47  ;;  %574 = vmatpush.msra.mxu1 %v475_v48 }
  0x9b   : > { %v442_v56 = vpop.permute.xlu1 %441  ;;  %v458_v57 = vpop.permute.xlu0 %457 }
  0x9c   : > { %v460_v58 = vsel %vm459_vm4, %v456_v32, %v458_v57  ;;  %v461_v59 = vsel %vm459_vm4, %v458_v57, %v456_v32  ;;  %v446_v60 = vsel %vm445_vm5, %v442_v56, %v444_v53  ;;  %v447_v61 = vsel %vm445_vm5, %v444_v53, %v442_v56 }
  0x9d   : > { %v467_v62 = vmul.f32 %v463_v51, %v461_v59  ;;  %v468_v63 = vmul.f32 %v464_v52, %v460_v58  ;;  %v453_v0 = vmul.f32 %v449_v54, %v447_v61  ;;  %v454_v3 = vmul.f32 %v450_v55, %v446_v60 }
  0x9f   : > { %555 = vmatpush.msra.mxu0 %v467_v62  ;;  %575 = vmatpush.msra.mxu1 %v468_v63  ;;  %v652_v63 = vld [vmem:[%s1320_s5] sm:$0xff] }
  0xa1   : > { %556 = vmatpush.msra.mxu0 %v453_v0  ;;  %576 = vmatpush.msra.mxu1 %v454_v3 }
  0xa3   : > { %v430_v9 = vpop.permute.xlu1 %429  ;;  %v428_v14 = vpop.permute.xlu0 %427 }
  0xa4   : > { %v432_v15 = vsel %vm431_vm6, %v428_v14, %v430_v9  ;;  %v433_v18 = vsel %vm431_vm6, %v430_v9, %v428_v14 }
  0xa5   : > { %v439_v19 = vmul.f32 %v435_v5, %v433_v18  ;;  %v440_v20 = vmul.f32 %v436_v6, %v432_v15 }
  0xa7   : > { %557 = vmatpush.msra.mxu0 %v439_v19  ;;  %577 = vmatpush.msra.mxu1 %v440_v20 }
  0xab   : > { %v414_v28 = vpop.permute.xlu0 %413  ;;  %v537_v39 = vpop.permute.xlu1 %536 }
  0xac   : > { %v418_v30 = vsel %vm417_vm7, %v412_v22, %v414_v28  ;;  %v419_v31 = vsel %vm417_vm7, %v414_v28, %v412_v22 }
  0xad   : > { %v425_v32 = vmul.f32 %v421_v23, %v419_v31  ;;  %v426_v35 = vmul.f32 %v422_v27, %v418_v30 }
  0xaf   : > { %558 = vmatpush.msra.mxu0 %v425_v32  ;;  %578 = vmatpush.msra.mxu1 %v426_v35 }
  0xb0   : > { %881 = vmatmul.msk.f32.vlgmr.msra.gmra.mxu0 %vm539_vm8, %v532_v36  ;;  %882 = vmatmul.msk.f32.vlgmr.msra.gmra.mxu1 %vm539_vm8, %v532_v36 }
  0xb1   : > { %721 = vmatpush.msrb.mxu0 %v1014_v1  ;;  %741 = vmatpush.msrb.mxu1 %v1022_v2 }
 0x12d   : > { %v560_v40 = vpop.f32.mrf.mxu0  ;;  %v580_v41 = vpop.f32.mrf.mxu1 }
 0x12e   : > { %v561_v42 = vadd.f32 %v560_v40, %v537_v39  ;;  %v581_v43 = vadd.f32 %v580_v41, %v537_v39  ;;  %v651_v40 = vld [vmem:[%s1319_s4] sm:$0xff] }
 0x130   : > { %v583_v44 = vmax.f32 %v561_v42, 0.0  ;;  %v584_v45 = vmax.f32 %v581_v43, 0.0 }
 0x132   : > { %645 = vrot.lane.b32.xlu0 %v584_v45, %s926_s26  ;;  %635 = vrot.lane.b32.xlu1 %v583_v44, %s925_s25  ;;  %v617_v19 = vmul.f32 %v583_v44, %v470_v37  ;;  %v618_v20 = vmul.f32 %v584_v45, %v471_v38 }
 0x133   : > { %643 = vrot.lane.b32.xlu2 %v583_v44, %s926_s26 }
 0x13a   : > { %627 = vrot.lane.b32.xlu0 %v583_v44, %s927_s27  ;;  %629 = vrot.lane.b32.xlu1 %v584_v45, %s927_s27 }
 0x13b   : > { %637 = vrot.lane.b32.xlu2 %v584_v45, %s925_s25 }
 0x142   : > { %621 = vrot.lane.b32.xlu0 %v584_v45, %s928_s28  ;;  %609 = vrot.lane.b32.xlu1 %v583_v44, %s929_s29 }
 0x143   : > { %619 = vrot.lane.b32.xlu2 %v583_v44, %s928_s28 }
 0x14a   : > { %601 = vrot.lane.b32.xlu0 %v583_v44, %s930_s30  ;;  %603 = vrot.lane.b32.xlu1 %v584_v45, %s930_s30 }
 0x14b   : > { %611 = vrot.lane.b32.xlu2 %v584_v45, %s929_s29 }
 0x152   : > { %595 = vrot.lane.b32.xlu0 %v584_v45, %s931_s12  ;;  %585 = vrot.lane.b32.xlu1 %v583_v44, %s932_s13 }
 0x153   : > { %593 = vrot.lane.b32.xlu2 %v583_v44, %s931_s12 }
 0x15a   : > { %655 = vperm.xlu0 %909, %v652_v63  }
 0x15b   : > { %587 = vrot.lane.b32.xlu2 %v584_v45, %s932_s13  ;;  %v701_v45 = vld [vmem:[%s1325_s10] sm:$0xff] }
 0x15c   : > { %885 = vmatmul.msk.f32.vlgmr.msrb.gmra.mxu0 %vm702_vm9, %v701_v45  ;;  %886 = vmatmul.msk.f32.vlgmr.msrb.gmra.mxu1 %vm702_vm9, %v701_v45 }
 0x18d   : > { %v644_v1 = vpop.permute.xlu2 %643 }
 0x195   : > { %v638_v2 = vpop.permute.xlu2 %637 }
 0x19d   : > { %v620_v48 = vpop.permute.xlu2 %619 }
 0x1a4   : > { %v646_v46 = vpop.permute.xlu0 %645  ;;  %v636_v47 = vpop.permute.xlu1 %635 }
 0x1a5   : > { %v639_v53 = vsel %vm508_vm0, %v636_v47, %v638_v2  ;;  %v640_v56 = vsel %vm508_vm0, %v638_v2, %v636_v47  ;;  %v647_v57 = vsel %vm522_vm1, %v644_v1, %v646_v46  ;;  %v648_v58 = vsel %vm522_vm1, %v646_v46, %v644_v1  ;;  %v746_v46 = vld [vmem:[%s1321_s6] sm:$0xff] }
 0x1a6   : > { %v649_v59 = vmul.f32 %v647_v57, %v526_v11  ;;  %v650_v60 = vmul.f32 %v648_v58, %v527_v12  ;;  %v641_v61 = vmul.f32 %v639_v53, %v512_v16  ;;  %v642_v62 = vmul.f32 %v640_v56, %v513_v17  ;;  %v612_v16 = vpop.permute.xlu2 %611 }
 0x1a8   : > { %668 = vmatpush.msra.mxu2 %v649_v59  ;;  %688 = vmatpush.msra.mxu3 %v650_v60 }
 0x1aa   : > { %669 = vmatpush.msra.mxu2 %v641_v61  ;;  %689 = vmatpush.msra.mxu3 %v642_v62  ;;  %v747_v62 = vld [vmem:[#allocation2] sm:$0x1] }
 0x1ac   : > { %v628_v0 = vpop.permute.xlu0 %627  ;;  %v630_v3 = vpop.permute.xlu1 %629 }
 0x1ad   : > { %v631_v8 = vsel %vm494_vm2, %v628_v0, %v630_v3  ;;  %v632_v11 = vsel %vm494_vm2, %v630_v3, %v628_v0 }
 0x1ae   : > { %v633_v12 = vmul.f32 %v631_v8, %v498_v24  ;;  %v634_v10 = vmul.f32 %v632_v11, %v499_v25  ;;  %v594_v22 = vpop.permute.xlu2 %593  ;;  %v748_v8 = vld [vmem:[%s1323_s8] sm:$0xff] }
 0x1b0   : > { %670 = vmatpush.msra.mxu2 %v633_v12  ;;  %690 = vmatpush.msra.mxu3 %v634_v10  ;;  %v749_v12 = vld [vmem:[%s1324_s9] sm:$0xff] }
 0x1b4   : > { %v622_v17 = vpop.permute.xlu0 %621  ;;  %v610_v9 = vpop.permute.xlu1 %609 }
 0x1b5   : > { %v623_v14 = vsel %vm480_vm3, %v620_v48, %v622_v17  ;;  %v624_v15 = vsel %vm480_vm3, %v622_v17, %v620_v48  ;;  %v613_v13 = vsel %vm459_vm4, %v610_v9, %v612_v16  ;;  %v614_v25 = vsel %vm459_vm4, %v612_v16, %v610_v9 }
 0x1b6   : > { %v625_v18 = vmul.f32 %v623_v14, %v484_v33  ;;  %v626_v24 = vmul.f32 %v624_v15, %v485_v34  ;;  %v615_v26 = vmul.f32 %v614_v25, %v463_v51  ;;  %v616_v33 = vmul.f32 %v613_v13, %v464_v52  ;;  %v588_v49 = vpop.permute.xlu2 %587 }
 0x1b8   : > { %671 = vmatpush.msra.mxu2 %v625_v18  ;;  %691 = vmatpush.msra.mxu3 %v626_v24 }
 0x1ba   : > { %672 = vmatpush.msra.mxu2 %v617_v19  ;;  %692 = vmatpush.msra.mxu3 %v618_v20 }
 0x1bc   : > { %v602_v34 = vpop.permute.xlu0 %601  ;;  %v604_v28 = vpop.permute.xlu1 %603  ;;  %673 = vmatpush.msra.mxu2 %v615_v26  ;;  %693 = vmatpush.msra.mxu3 %v616_v33 }
 0x1bd   : > { %v605_v30 = vsel %vm445_vm5, %v602_v34, %v604_v28  ;;  %v606_v29 = vsel %vm445_vm5, %v604_v28, %v602_v34 }
 0x1be   : > { %v607_v37 = vmul.f32 %v606_v29, %v449_v54  ;;  %v608_v38 = vmul.f32 %v605_v30, %v450_v55 }
 0x1c0   : > { %674 = vmatpush.msra.mxu2 %v607_v37  ;;  %694 = vmatpush.msra.mxu3 %v608_v38 }
 0x1c4   : > { %v596_v51 = vpop.permute.xlu0 %595  ;;  %v586_v52 = vpop.permute.xlu1 %585 }
 0x1c5   : > { %v597_v31 = vsel %vm431_vm6, %v594_v22, %v596_v51  ;;  %v598_v32 = vsel %vm431_vm6, %v596_v51, %v594_v22  ;;  %v589_v35 = vsel %vm417_vm7, %v586_v52, %v588_v49  ;;  %v590_v54 = vsel %vm417_vm7, %v588_v49, %v586_v52 }
 0x1c6   : > { %v599_v50 = vmul.f32 %v598_v32, %v435_v5  ;;  %v600_v55 = vmul.f32 %v597_v31, %v436_v6  ;;  %v591_v36 = vmul.f32 %v590_v54, %v421_v23  ;;  %v592_v39 = vmul.f32 %v589_v35, %v422_v27 }
 0x1c7   : > { %v934_v23 = vmov 256.0  }
 0x1c8   : > { %675 = vmatpush.msra.mxu2 %v599_v50  ;;  %695 = vmatpush.msra.mxu3 %v600_v55  ;;  %911 = vrcp.f32 %v934_v23 }
 0x1ca   : > { %676 = vmatpush.msra.mxu2 %v591_v36  ;;  %696 = vmatpush.msra.mxu3 %v592_v39 }
 0x1cb   : > { %883 = vmatmul.msk.f32.vlgmr.msra.gmra.mxu2 %vm539_vm8, %v651_v40  ;;  %884 = vmatmul.msk.f32.vlgmr.msra.gmra.mxu3 %vm539_vm8, %v651_v40 }
 0x1cc   : > { %v656_v7 = vpop.permute.xlu0 %655 }
 0x1ce   : > { %v912_v21 = vpop.eup %911 }
 0x1cf   : > { %v754_v27 = vmul.f32 256.0, %v912_v21  ;;  %vm758_vm10 = vweird.f32 %v912_v21 }
 0x1d1   : > { %v755_v43 = vsub.f32 1.0, %v754_v27 }
 0x1d3   : > { %v756_v44 = vmul.f32 %v912_v21, %v755_v43 }
 0x1d5   : > { %v757_v1 = vadd.f32 %v912_v21, %v756_v44 }
 0x1d7   : > { %v759_v2 = vsel %vm758_vm10, %v912_v21, %v757_v1 }
 0x1d9   : > { %v723_v29 = vpop.f32.mrf.mxu0  ;;  %v743_v37 = vpop.f32.mrf.mxu1 }
 0x24e   : > { %v678_v4 = vpop.f32.mrf.mxu2  ;;  %v698_v5 = vpop.f32.mrf.mxu3 }
 0x24f   : > { %v679_v6 = vadd.f32 %v678_v4, %v656_v7  ;;  %v699_v41 = vadd.f32 %v698_v5, %v656_v7 }
 0x251   : > { %v750_v42 = vadd.f32 %v699_v41, %v679_v6 }
 0x253   : > { %751 = vadd.xlane.f32.xlu1 %v750_v42 }
 0x2c6   : > { %v752_v47 = vpop.xlane.xlu1 %751 }
 0x2c7   : > { %v760_v48 = vmul.f32 %v759_v2, %v752_v47 }
 0x2c9   : > { %v761_v53 = vmul.f32 %v760_v48, %v746_v46 }
 0x2cb   : > { %v763_v56 = vsel %vm762_vm11, %v761_v53, 0.0 }
 0x2cc   : > { %v764_v57 = vrot.slane %v763_v56, 4 }
 0x2ce   : > { %v765_v58 = vadd.f32 %v764_v57, %v763_v56 }
 0x2d0   : > { %v766_v59 = vrot.slane %v765_v58, 2 }
 0x2d2   : > { %v767_v60 = vadd.f32 %v766_v59, %v765_v58 }
 0x2d4   : > { %v768_v61 = vrot.slane %v767_v60, 1 }
 0x2d6   : > { %v769_v63 = vadd.f32 %v768_v61, %v767_v60 }
 0x2d8   : > { %v770_v0 = vadd.f32 %v769_v63, %v747_v62 }
 0x2da   : > { %v771_v3 = vmax.f32 %v770_v0, 0.0 }
 0x2dc   : > { %v772_v11 = vperm.slane %v771_v3, 0 }
 0x2de   : > { %v773_v10 = vmul.f32 %v772_v11, %v748_v8 }
 0x2e0   : > { %v775_v16 = vadd.f32 %v773_v10, %v749_v12 }
 0x2e2   : > { %v887_v17 = vmul.f32 -1.442695, %v775_v16 }
 0x2e4   : > { %913 = vpow2.f32 %v887_v17 }
 0x2ea   : > { %v914_v9 = vpop.eup %913 }
 0x2eb   : > { %v779_v14 = vadd.f32 1.0, %v914_v9 }
 0x2ed   : > { %915 = vrcp.f32 %v779_v14  ;;  %v791_v13 = vand.u32 2147483648, %v779_v14  ;;  %v789_v19 = vand.u32 2147483647, %v779_v14  ;;  %vm785_vm13 = vweird.f32 %v779_v14 }
 0x2ef   : > { %v792_v22 = vor.u32 1.1754944e-38, %v791_v13  ;;  %vm790_vm15 = vcmp.eq.f32.partialorder %v789_v19, 8.507059e+37 }
 0x2f3   : > { %v916_v15 = vpop.eup %915 }
 0x2f4   : > { %v781_v18 = vmul.f32 %v916_v15, %v779_v14  ;;  %vm786_vm12 = vweird.f32 %v916_v15 }
 0x2f5   : > { %vm787_vm14 = vmor %vm785_vm13, %vm786_vm12 }
 0x2f6   : > { %v782_v24 = vsub.f32 1.0, %v781_v18 }
 0x2f8   : > { %v783_v25 = vmul.f32 %v916_v15, %v782_v24 }
 0x2fa   : > { %v784_v20 = vadd.f32 %v916_v15, %v783_v25 }
 0x2fc   : > { %v788_v26 = vsel %vm787_vm14, %v916_v15, %v784_v20 }
 0x2fd   : > { %v793_v33 = vsel %vm790_vm15, %v792_v22, %v788_v26 }
 0x2fe   : > { %797 = vperm.xlu2 %910, %v793_v33  }
 0x358   : > { %v798_v34 = vpop.permute.xlu2 %797 }
 0x359   : > { %v800_v28 = vmul.f32 %v798_v34, %v679_v6  ;;  %v801_v30 = vmul.f32 %v798_v34, %v699_v41 }
 0x35b   : > { %v802_v38 = vmax.f32 %v800_v28, 0.0  ;;  %v803_v49 = vmax.f32 %v801_v30, 0.0 }
 0x35d   : > { %v804_v51 = vadd.f32 %v802_v38, %v723_v29  ;;  %v805_v52 = vadd.f32 %v803_v49, %v743_v37 }
 0x35f   : > { %806 = vst [vmem:[%s390_s15] sm:$0xff] %v804_v51 }
 0x360   : > { %807 = vst [vmem:[%s390_s15 + $0x8] sm:$0xff] %v805_v52 }
 0x361 PF: > { %s23_s19 = sadd.s32 1, %s923_s19  }
 0x362   : > { %p20_p4 = scmp.ge.s32.totalorder %s23_s19, 4  }
 0x364   :  { %22 = sbr.rel (!%p20_p4) target bundleno = 3 (0x3), region = 102 }

</bundles_post_ra>
